<compile_context>
chip_gen: v7x
topology: tpu7x:2x2x1
jax: 0.10.0
libtpu: 0.0.40
codegen_flags: <defaults>
</compile_context>

<pallas_src>
import functools
import math
from typing import Tuple, Union

import jax
import jax.numpy as jnp
from jax import lax
from jax.experimental import pallas as pl
from jax.experimental.pallas import tpu as pltpu

IntOrPair = Union[int, Tuple[int, int]]


def force_pair(v: IntOrPair) -> Tuple[int, int]:
    if isinstance(v, tuple):
        if len(v) != 2:
            raise ValueError(v)
        return (int(v[0]), int(v[1]))
    elif isinstance(v, int):
        return (v, v)
    raise ValueError(v)


def _round_up(x: int, m: int) -> int:
    return ((x + m - 1) // m) * m


@functools.lru_cache(maxsize=None)
def _vmem_budget_bytes() -> int:
    """Chip-aware scoped-VMEM budget (v7x has only 64 MiB physical)."""
    cap = 64 * 1024 * 1024
    try:
        info = pltpu.get_tpu_info()
        cap = int(getattr(info, "vmem_capacity_bytes", cap)) or cap
    except Exception:
        pass
    return max(16 * 1024 * 1024, min(cap // 2, 64 * 1024 * 1024))


@functools.lru_cache(maxsize=None)
def _tpu_generation() -> int:
    try:
        kind = jax.devices()[0].device_kind.lower()
    except Exception:
        return 6
    for g in (7, 6, 5, 4, 3):
        if f"v{g}" in kind or f"tpu{g}" in kind:
            return g
    return 6


# --------------------------- fused-im2col conv path ---------------------------

def _fused_conv(xp, w_taps, *, B, Hp, Wp, C, KH, KW, SH, OH, OW, Np, t_oh,
                vmem_limit):
    """xp: (B, Hp, Wp, C) compute-dtype, w_taps: (KH*KW, C, Np) compute-dtype.

    Returns (B, ceil(OH/t_oh)*t_oh, OW, Np) f32.  stride_w must be 1.
    """
    n_ohb = pl.cdiv(OH, t_oh)
    itemsize = jnp.dtype(xp.dtype).itemsize

    def kernel(x_ref, w_ref, o_ref):
        # x_ref: (1, Hp, Wp, C)  whole padded image of this batch element
        # w_ref: (KH*KW, C, Np)  all taps
        # o_ref: (1, t_oh, OW, Np) f32
        oh0 = pl.program_id(1) * t_oh
        w_tap = [w_ref[t] for t in range(KH * KW)]      # hoisted: one load per tap

        def row_body(r, carry):
            # Clamp tail rows of the last (partial) block; they are sliced off.
            oh = jnp.minimum(oh0 + r, OH - 1)
            ih0 = oh * SH
            acc = jnp.zeros((OW, Np), jnp.float32)
            for kh in range(KH):
                row = x_ref[0, pl.ds(ih0 + kh, 1), :, :][0]     # (Wp, C) in VMEM
                for kw in range(KW):
                    acc = acc + jnp.dot(row[kw:kw + OW, :], w_tap[kh * KW + kw],
                                        preferred_element_type=jnp.float32)
            o_ref[0, pl.ds(r, 1)] = acc[None].astype(o_ref.dtype)
            return carry

        lax.fori_loop(0, t_oh, row_body, 0)

    flops = 2 * B * OH * OW * KH * KW * C * Np
    bytes_accessed = ((B * Hp * Wp * C + KH * KW * C * Np) * itemsize
                      + B * n_ohb * t_oh * OW * Np * 4)

    return pl.pallas_call(
        kernel,
        out_shape=jax.ShapeDtypeStruct((B, n_ohb * t_oh, OW, Np), jnp.float32),
        grid_spec=pltpu.PrefetchScalarGridSpec(
            num_scalar_prefetch=0,
            grid=(B, n_ohb),
            in_specs=[
                pl.BlockSpec((1, Hp, Wp, C), lambda b, o: (b, 0, 0, 0)),
                pl.BlockSpec((KH * KW, C, Np), lambda b, o: (0, 0, 0)),
            ],
            out_specs=pl.BlockSpec((1, t_oh, OW, Np), lambda b, o: (b, o, 0, 0)),
        ),
        compiler_params=pltpu.CompilerParams(
            dimension_semantics=("parallel", "parallel"),
            vmem_limit_bytes=int(vmem_limit),
        ),
        cost_estimate=pl.CostEstimate(flops=int(flops), transcendentals=0,
                                      bytes_accessed=int(bytes_accessed)),
    )(xp, w_taps)


# ----------------------- fallback: im2col + Pallas matmul ---------------------

def _matmul_kernel(p_ref, w_ref, o_ref):
    # Single K block: write straight into the f32 output tile (no scratch).
    o_ref[...] = jnp.dot(p_ref[...], w_ref[...],
                         preferred_element_type=jnp.float32).astype(o_ref.dtype)


def _im2col_matmul(patches, w2d, *, budget, gen):
    """patches: (M, K) compute-dtype, w2d: (K, Np) compute-dtype -> (M, Np) f32."""
    M, K = patches.shape
    K2, Np = w2d.shape
    assert K == K2 and Np % 128 == 0
    itemsize = jnp.dtype(patches.dtype).itemsize

    # MXU-width-aware N tile: 256 on v6e/v7x when there is enough N, else 128.
    tn = 256 if (gen >= 6 and Np % 256 == 0) else 128
    tn = min(tn, Np)

    # Biggest M tile that fits the VMEM budget (double-buffered in/out).
    tm = 8
    for cand in (512, 256, 128, 64, 32, 16, 8):
        if cand > _round_up(M, 8):
            continue
        need = 2 * cand * K * itemsize + 2 * K * tn * itemsize + 2 * cand * tn * 4
        if need <= budget:
            tm = cand
            break
    # v7x megacore: keep >= 2 parallel blocks when there is enough work.
    while tm > 8 and pl.cdiv(M, tm) * (Np // tn) < 2:
        tm //= 2

    grid = (pl.cdiv(M, tm), Np // tn)
    return pl.pallas_call(
        _matmul_kernel,
        out_shape=jax.ShapeDtypeStruct((M, Np), jnp.float32),
        grid_spec=pltpu.PrefetchScalarGridSpec(
            num_scalar_prefetch=0,
            grid=grid,
            in_specs=[
                pl.BlockSpec((tm, K), lambda i, j: (i, 0)),   # K = full dim, unpadded
                pl.BlockSpec((K, tn), lambda i, j: (0, j)),
            ],
            out_specs=pl.BlockSpec((tm, tn), lambda i, j: (i, j)),
        ),
        compiler_params=pltpu.CompilerParams(
            dimension_semantics=("parallel", "parallel"),
            vmem_limit_bytes=int(budget),
        ),
        cost_estimate=pl.CostEstimate(
            flops=int(2 * M * K * Np), transcendentals=0,
            bytes_accessed=int(M * K * itemsize + K * Np * itemsize + M * Np * 4)),
    )(patches, w2d)


# ------------------------------- forward pass ---------------------------------

@functools.partial(jax.jit, static_argnames=("stride", "padding", "compute_dtype"))
def _conv2d_forward(x, weight, *, stride, padding, compute_dtype):
    B, C, H, W = x.shape
    OC, C2, KH, KW = weight.shape
    assert C == C2
    SH, SW = stride
    PH, PW = padding
    OH = (H + 2 * PH - KH) // SH + 1
    OW = (W + 2 * PW - KW) // SW + 1
    Hp, Wp = H + 2 * PH, W + 2 * PW
    Np = _round_up(OC, 128)            # lane-dense output channels

    gen = _tpu_generation()
    budget = _vmem_budget_bytes()
    itemsize = jnp.dtype(compute_dtype).itemsize

    # Glue (all fused by jit): NHWC view + zero pad + compute-dtype cast.
    x_nhwc = jnp.transpose(x, (0, 2, 3, 1)).astype(compute_dtype)
    xp = jnp.pad(x_nhwc, ((0, 0), (PH, PH), (PW, PW), (0, 0)))
    w_khwc_n = jnp.transpose(weight, (2, 3, 1, 0))          # (KH, KW, C, OC)

    # Fused-path tile of output rows (bounded output block, >= 2 parallel blocks).
    t_oh = max(1, min(OH, (2 * 1024 * 1024) // max(1, OW * Np * 4)))
    n_ohb = pl.cdiv(OH, t_oh)
    while B * n_ohb < 2 and t_oh > 1:
        t_oh = pl.cdiv(t_oh, 2)
        n_ohb = pl.cdiv(OH, t_oh)
    fused_bytes = 2 * (Hp * Wp * C * itemsize
                       + KH * KW * C * Np * itemsize
                       + t_oh * OW * Np * 4) + (2 << 20)
    use_fused = (SW == 1) and (fused_bytes <= budget)

    if use_fused:
        w_taps = jnp.pad(w_khwc_n.reshape(KH * KW, C, OC),
                         ((0, 0), (0, 0), (0, Np - OC))).astype(compute_dtype)
        out = _fused_conv(xp, w_taps, B=B, Hp=Hp, Wp=Wp, C=C, KH=KH, KW=KW,
                          SH=SH, OH=OH, OW=OW, Np=Np, t_oh=t_oh,
                          vmem_limit=budget)
        out = out[:, :OH, :, :OC]                            # (B, OH, OW, OC)
    else:
        # TODO(synk): extend the fused path to stride_w > 1 (strided in-kernel
        # slices) and an N/H-tiled image window so this im2col fallback retires.
        taps = []
        for kh in range(KH):
            for kw in range(KW):
                taps.append(xp[:, kh:kh + SH * OH:SH, kw:kw + SW * OW:SW, :])
        p = jnp.stack(taps, axis=3)                          # (B, OH, OW, KH*KW, C)
        patches = p.reshape(B * OH * OW, KH * KW * C)        # (M, K), unpadded
        w2d = jnp.pad(w_khwc_n.reshape(KH * KW * C, OC),
                      ((0, 0), (0, Np - OC))).astype(compute_dtype)
        out2d = _im2col_matmul(patches, w2d, budget=budget, gen=gen)
        out = out2d[:, :OC].reshape(B, OH, OW, OC)

    return jnp.transpose(out, (0, 3, 1, 2))                  # NCHW, float32


# --------------------------------- module --------------------------------------

class Conv2d:
    """Same forward semantics as torch.nn.Conv2d(bias=False)."""

    def __init__(self, in_channels: int, out_channels: int,
                 kernel_size: IntOrPair, stride: IntOrPair = 1,
                 padding: IntOrPair = 0, *, key=None,
                 compute_dtype=jnp.bfloat16):
        self.in_channels = in_channels
        self.out_channels = out_channels
        self.kernel_size = force_pair(kernel_size)
        self.stride = force_pair(stride)
        self.padding = force_pair(padding)
        self.compute_dtype = jnp.dtype(compute_dtype)   # bf16 operands, f32 accum
        kh, kw = self.kernel_size
        norm = math.sqrt(1.0 / (in_channels * kh * kw))
        if key is None:
            key = jax.random.PRNGKey(0)
        u = jax.random.uniform(key, (out_channels, in_channels, kh, kw),
                               dtype=jnp.float32)
        self.weight = (2.0 * u - 1.0) * norm            # (OC, C, KH, KW)

    def __call__(self, x: jax.Array) -> jax.Array:
        """x: (B, C, H, W) f32 -> (B, OC, OH, OW) f32."""
        return _conv2d_forward(x, self.weight, stride=self.stride,
                               padding=self.padding,
                               compute_dtype=self.compute_dtype)

    forward = __call__


# --------------------------------- self-test -----------------------------------

if __name__ == "__main__":
    key = jax.random.PRNGKey(0)
    kx, kw1, kw2 = jax.random.split(key, 3)

    B, C, H, W = 2, 4, 16, 16
    OC = 8
    x = jax.random.normal(kx, (B, C, H, W), dtype=jnp.float32)

    def reference(x, w, stride, padding, dtype):
        # Apples-to-apples: same bf16 operand rounding, full-precision conv.
        xr = x.astype(dtype).astype(jnp.float32)
        wr = w.astype(dtype).astype(jnp.float32)
        return jax.lax.conv_general_dilated(
            xr, wr, window_strides=stride,
            padding=[(padding[0], padding[0]), (padding[1], padding[1])],
            dimension_numbers=("NCHW", "OIHW", "NCHW"),
            precision=jax.lax.Precision.HIGHEST)

    # Fused-im2col path: 3x3, stride 1, padding 1.
    conv1 = Conv2d(C, OC, 3, stride=1, padding=1, key=kw1)
    y1 = jax.block_until_ready(conv1(x))
    r1 = reference(x, conv1.weight, conv1.stride, conv1.padding, conv1.compute_dtype)
    assert y1.shape == (B, OC, H, W), y1.shape
    err1 = float(jnp.max(jnp.abs(y1 - r1)))
    assert jnp.allclose(y1, r1, atol=2e-3, rtol=2e-3), err1

    # Fallback (im2col + matmul) path: stride 2 forces it.
    conv2 = Conv2d(C, OC, 3, stride=2, padding=1, key=kw2)
    y2 = jax.block_until_ready(conv2(x))
    r2 = reference(x, conv2.weight, conv2.stride, conv2.padding, conv2.compute_dtype)
    assert y2.shape == (B, OC, 8, 8), y2.shape
    err2 = float(jnp.max(jnp.abs(y2 - r2)))
    assert jnp.allclose(y2, r2, atol=2e-3, rtol=2e-3), err2

    print("KERNEL_OK")
</pallas_src>

<mosaic_0001>
module attributes {stable_mosaic.version = 11 : i64} {
  func.func @kernel(%arg0: i32, %arg1: i32, %arg2: memref<1x18x18x4xbf16, #tpu.memory_space<vmem>>, %arg3: memref<9x4x128xbf16, #tpu.memory_space<vmem>>, %arg4: memref<1x16x16x128xf32, #tpu.memory_space<vmem>>) attributes {dimension_semantics = [#tpu.dimension_semantics<parallel>, #tpu.dimension_semantics<parallel>], iteration_bounds = array<i64: 2, 1>, scalar_prefetch = 0 : i64, scratch_operands = 0 : i64, tpu.core_type = #tpu.core_type<tc>, window_params = [{transform_indices = @transform_0, window_bounds = array<i64: 1, 18, 18, 4>}, {pipeline_mode = #tpu.pipeline_mode<synchronous>, transform_indices = @transform_1, window_bounds = array<i64: 9, 4, 128>}, {transform_indices = @transform_2, window_bounds = array<i64: 1, 16, 16, 128>}]} {
    %c16_i32 = arith.constant 16 : i32
    %0 = arith.muli %arg1, %c16_i32 : i32
    %c0 = arith.constant 0 : index
    %c0_0 = arith.constant 0 : index
    %c0_1 = arith.constant 0 : index
    %1 = vector.load %arg3[%c0, %c0_0, %c0_1] : memref<9x4x128xbf16, #tpu.memory_space<vmem>>, vector<1x4x128xbf16>
    %2 = vector.shape_cast %1 : vector<1x4x128xbf16> to vector<4x128xbf16>
    %c1 = arith.constant 1 : index
    %c0_2 = arith.constant 0 : index
    %c0_3 = arith.constant 0 : index
    %3 = vector.load %arg3[%c1, %c0_2, %c0_3] : memref<9x4x128xbf16, #tpu.memory_space<vmem>>, vector<1x4x128xbf16>
    %4 = vector.shape_cast %3 : vector<1x4x128xbf16> to vector<4x128xbf16>
    %c2 = arith.constant 2 : index
    %c0_4 = arith.constant 0 : index
    %c0_5 = arith.constant 0 : index
    %5 = vector.load %arg3[%c2, %c0_4, %c0_5] : memref<9x4x128xbf16, #tpu.memory_space<vmem>>, vector<1x4x128xbf16>
    %6 = vector.shape_cast %5 : vector<1x4x128xbf16> to vector<4x128xbf16>
    %c3 = arith.constant 3 : index
    %c0_6 = arith.constant 0 : index
    %c0_7 = arith.constant 0 : index
    %7 = vector.load %arg3[%c3, %c0_6, %c0_7] : memref<9x4x128xbf16, #tpu.memory_space<vmem>>, vector<1x4x128xbf16>
    %8 = vector.shape_cast %7 : vector<1x4x128xbf16> to vector<4x128xbf16>
    %c4 = arith.constant 4 : index
    %c0_8 = arith.constant 0 : index
    %c0_9 = arith.constant 0 : index
    %9 = vector.load %arg3[%c4, %c0_8, %c0_9] : memref<9x4x128xbf16, #tpu.memory_space<vmem>>, vector<1x4x128xbf16>
    %10 = vector.shape_cast %9 : vector<1x4x128xbf16> to vector<4x128xbf16>
    %c5 = arith.constant 5 : index
    %c0_10 = arith.constant 0 : index
    %c0_11 = arith.constant 0 : index
    %11 = vector.load %arg3[%c5, %c0_10, %c0_11] : memref<9x4x128xbf16, #tpu.memory_space<vmem>>, vector<1x4x128xbf16>
    %12 = vector.shape_cast %11 : vector<1x4x128xbf16> to vector<4x128xbf16>
    %c6 = arith.constant 6 : index
    %c0_12 = arith.constant 0 : index
    %c0_13 = arith.constant 0 : index
    %13 = vector.load %arg3[%c6, %c0_12, %c0_13] : memref<9x4x128xbf16, #tpu.memory_space<vmem>>, vector<1x4x128xbf16>
    %14 = vector.shape_cast %13 : vector<1x4x128xbf16> to vector<4x128xbf16>
    %c7 = arith.constant 7 : index
    %c0_14 = arith.constant 0 : index
    %c0_15 = arith.constant 0 : index
    %15 = vector.load %arg3[%c7, %c0_14, %c0_15] : memref<9x4x128xbf16, #tpu.memory_space<vmem>>, vector<1x4x128xbf16>
    %16 = vector.shape_cast %15 : vector<1x4x128xbf16> to vector<4x128xbf16>
    %c8 = arith.constant 8 : index
    %c0_16 = arith.constant 0 : index
    %c0_17 = arith.constant 0 : index
    %17 = vector.load %arg3[%c8, %c0_16, %c0_17] : memref<9x4x128xbf16, #tpu.memory_space<vmem>>, vector<1x4x128xbf16>
    %18 = vector.shape_cast %17 : vector<1x4x128xbf16> to vector<4x128xbf16>
    %c0_i32 = arith.constant 0 : i32
    %c16_i32_18 = arith.constant 16 : i32
    %19 = arith.addi %c0_i32, %c16_i32_18 : i32
    %c1_i32 = arith.constant 1 : i32
    scf.for %arg5 = %c0_i32 to %19 step %c1_i32  : i32 {
      %20 = arith.addi %0, %arg5 : i32
      %c15_i32 = arith.constant 15 : i32
      %21 = arith.minsi %20, %c15_i32 : i32
      %c1_i32_20 = arith.constant 1 : i32
      %22 = arith.muli %21, %c1_i32_20 : i32
      %cst = arith.constant 0.000000e+00 : f32
      %23 = vector.broadcast %cst : f32 to vector<16x128xf32>
      %c0_i32_21 = arith.constant 0 : i32
      %24 = arith.addi %22, %c0_i32_21 : i32
      %c0_22 = arith.constant 0 : index
      %25 = arith.index_cast %24 : i32 to index
      %c0_23 = arith.constant 0 : index
      %c0_24 = arith.constant 0 : index
      %26 = vector.load %arg2[%c0_22, %25, %c0_23, %c0_24] : memref<1x18x18x4xbf16, #tpu.memory_space<vmem>>, vector<1x1x18x4xbf16>
      %27 = vector.shape_cast %26 : vector<1x1x18x4xbf16> to vector<1x18x4xbf16>
      %28 = vector.shape_cast %27 : vector<1x18x4xbf16> to vector<18x4xbf16>
      %29 = vector.extract_strided_slice %28 {offsets = [0, 0], sizes = [16, 4], strides = [1, 1]} : vector<18x4xbf16> to vector<16x4xbf16>
      %cst_25 = arith.constant dense<0.000000e+00> : vector<16x128xf32>
      %30 = tpu.matmul %29, %2, %cst_25 {dimension_numbers = #tpu.dot_dimension_numbers<[1], [0], [0], [1], [0, 0, 1, 1], [], []>} : vector<16x4xbf16>, vector<4x128xbf16>, vector<16x128xf32> -> vector<16x128xf32>
      %31 = arith.addf %23, %30 : vector<16x128xf32>
      %32 = vector.extract_strided_slice %28 {offsets = [1, 0], sizes = [16, 4], strides = [1, 1]} : vector<18x4xbf16> to vector<16x4xbf16>
      %cst_26 = arith.constant dense<0.000000e+00> : vector<16x128xf32>
      %33 = tpu.matmul %32, %4, %cst_26 {dimension_numbers = #tpu.dot_dimension_numbers<[1], [0], [0], [1], [0, 0, 1, 1], [], []>} : vector<16x4xbf16>, vector<4x128xbf16>, vector<16x128xf32> -> vector<16x128xf32>
      %34 = arith.addf %31, %33 : vector<16x128xf32>
      %35 = vector.extract_strided_slice %28 {offsets = [2, 0], sizes = [16, 4], strides = [1, 1]} : vector<18x4xbf16> to vector<16x4xbf16>
      %cst_27 = arith.constant dense<0.000000e+00> : vector<16x128xf32>
      %36 = tpu.matmul %35, %6, %cst_27 {dimension_numbers = #tpu.dot_dimension_numbers<[1], [0], [0], [1], [0, 0, 1, 1], [], []>} : vector<16x4xbf16>, vector<4x128xbf16>, vector<16x128xf32> -> vector<16x128xf32>
      %37 = arith.addf %34, %36 : vector<16x128xf32>
      %c1_i32_28 = arith.constant 1 : i32
      %38 = arith.addi %22, %c1_i32_28 : i32
      %c0_29 = arith.constant 0 : index
      %39 = arith.index_cast %38 : i32 to index
      %c0_30 = arith.constant 0 : index
      %c0_31 = arith.constant 0 : index
      %40 = vector.load %arg2[%c0_29, %39, %c0_30, %c0_31] : memref<1x18x18x4xbf16, #tpu.memory_space<vmem>>, vector<1x1x18x4xbf16>
      %41 = vector.shape_cast %40 : vector<1x1x18x4xbf16> to vector<1x18x4xbf16>
      %42 = vector.shape_cast %41 : vector<1x18x4xbf16> to vector<18x4xbf16>
      %43 = vector.extract_strided_slice %42 {offsets = [0, 0], sizes = [16, 4], strides = [1, 1]} : vector<18x4xbf16> to vector<16x4xbf16>
      %cst_32 = arith.constant dense<0.000000e+00> : vector<16x128xf32>
      %44 = tpu.matmul %43, %8, %cst_32 {dimension_numbers = #tpu.dot_dimension_numbers<[1], [0], [0], [1], [0, 0, 1, 1], [], []>} : vector<16x4xbf16>, vector<4x128xbf16>, vector<16x128xf32> -> vector<16x128xf32>
      %45 = arith.addf %37, %44 : vector<16x128xf32>
      %46 = vector.extract_strided_slice %42 {offsets = [1, 0], sizes = [16, 4], strides = [1, 1]} : vector<18x4xbf16> to vector<16x4xbf16>
      %cst_33 = arith.constant dense<0.000000e+00> : vector<16x128xf32>
      %47 = tpu.matmul %46, %10, %cst_33 {dimension_numbers = #tpu.dot_dimension_numbers<[1], [0], [0], [1], [0, 0, 1, 1], [], []>} : vector<16x4xbf16>, vector<4x128xbf16>, vector<16x128xf32> -> vector<16x128xf32>
      %48 = arith.addf %45, %47 : vector<16x128xf32>
      %49 = vector.extract_strided_slice %42 {offsets = [2, 0], sizes = [16, 4], strides = [1, 1]} : vector<18x4xbf16> to vector<16x4xbf16>
      %cst_34 = arith.constant dense<0.000000e+00> : vector<16x128xf32>
      %50 = tpu.matmul %49, %12, %cst_34 {dimension_numbers = #tpu.dot_dimension_numbers<[1], [0], [0], [1], [0, 0, 1, 1], [], []>} : vector<16x4xbf16>, vector<4x128xbf16>, vector<16x128xf32> -> vector<16x128xf32>
      %51 = arith.addf %48, %50 : vector<16x128xf32>
      %c2_i32 = arith.constant 2 : i32
      %52 = arith.addi %22, %c2_i32 : i32
      %c0_35 = arith.constant 0 : index
      %53 = arith.index_cast %52 : i32 to index
      %c0_36 = arith.constant 0 : index
      %c0_37 = arith.constant 0 : index
      %54 = vector.load %arg2[%c0_35, %53, %c0_36, %c0_37] : memref<1x18x18x4xbf16, #tpu.memory_space<vmem>>, vector<1x1x18x4xbf16>
      %55 = vector.shape_cast %54 : vector<1x1x18x4xbf16> to vector<1x18x4xbf16>
      %56 = vector.shape_cast %55 : vector<1x18x4xbf16> to vector<18x4xbf16>
      %57 = vector.extract_strided_slice %56 {offsets = [0, 0], sizes = [16, 4], strides = [1, 1]} : vector<18x4xbf16> to vector<16x4xbf16>
      %cst_38 = arith.constant dense<0.000000e+00> : vector<16x128xf32>
      %58 = tpu.matmul %57, %14, %cst_38 {dimension_numbers = #tpu.dot_dimension_numbers<[1], [0], [0], [1], [0, 0, 1, 1], [], []>} : vector<16x4xbf16>, vector<4x128xbf16>, vector<16x128xf32> -> vector<16x128xf32>
      %59 = arith.addf %51, %58 : vector<16x128xf32>
      %60 = vector.extract_strided_slice %56 {offsets = [1, 0], sizes = [16, 4], strides = [1, 1]} : vector<18x4xbf16> to vector<16x4xbf16>
      %cst_39 = arith.constant dense<0.000000e+00> : vector<16x128xf32>
      %61 = tpu.matmul %60, %16, %cst_39 {dimension_numbers = #tpu.dot_dimension_numbers<[1], [0], [0], [1], [0, 0, 1, 1], [], []>} : vector<16x4xbf16>, vector<4x128xbf16>, vector<16x128xf32> -> vector<16x128xf32>
      %62 = arith.addf %59, %61 : vector<16x128xf32>
      %63 = vector.extract_strided_slice %56 {offsets = [2, 0], sizes = [16, 4], strides = [1, 1]} : vector<18x4xbf16> to vector<16x4xbf16>
      %cst_40 = arith.constant dense<0.000000e+00> : vector<16x128xf32>
      %64 = tpu.matmul %63, %18, %cst_40 {dimension_numbers = #tpu.dot_dimension_numbers<[1], [0], [0], [1], [0, 0, 1, 1], [], []>} : vector<16x4xbf16>, vector<4x128xbf16>, vector<16x128xf32> -> vector<16x128xf32>
      %65 = arith.addf %62, %64 : vector<16x128xf32>
      %66 = vector.shape_cast %65 : vector<16x128xf32> to vector<1x16x128xf32>
      %c0_41 = arith.constant 0 : index
      %67 = arith.index_cast %arg5 : i32 to index
      %c0_42 = arith.constant 0 : index
      %c0_43 = arith.constant 0 : index
      %68 = vector.load %arg4[%c0_41, %67, %c0_42, %c0_43] : memref<1x16x16x128xf32, #tpu.memory_space<vmem>>, vector<1x1x16x128xf32>
      %69 = vector.shape_cast %68 : vector<1x1x16x128xf32> to vector<1x16x128xf32>
      %70 = vector.shape_cast %66 : vector<1x16x128xf32> to vector<1x1x16x128xf32>
      tpu.vector_store %arg4[%c0_41, %67, %c0_42, %c0_43], %70 {strides = array<i32>} : memref<1x16x16x128xf32, #tpu.memory_space<vmem>>, vector<1x1x16x128xf32>,
    }
    %c16_i32_19 = arith.constant 16 : i32
    return
  }
  func.func @transform_0(%arg0: i32, %arg1: i32) -> (i32, i32, i32, i32) {
    %c0_i32 = arith.constant 0 : i32
    %c0_i32_0 = arith.constant 0 : i32
    %c0_i32_1 = arith.constant 0 : i32
    %c0_i32_2 = arith.constant 0 : i32
    return %arg0, %c0_i32, %c0_i32_0, %c0_i32_1 : i32, i32, i32, i32
  }
  func.func @transform_1(%arg0: i32, %arg1: i32) -> (i32, i32, i32) {
    %c0_i32 = arith.constant 0 : i32
    %c0_i32_0 = arith.constant 0 : i32
    %c0_i32_1 = arith.constant 0 : i32
    %c0_i32_2 = arith.constant 0 : i32
    return %c0_i32, %c0_i32_0, %c0_i32_1 : i32, i32, i32
  }
  func.func @transform_2(%arg0: i32, %arg1: i32) -> (i32, i32, i32, i32) {
    %c0_i32 = arith.constant 0 : i32
    %c0_i32_0 = arith.constant 0 : i32
    %c0_i32_1 = arith.constant 0 : i32
    return %arg0, %arg1, %c0_i32, %c0_i32_0 : i32, i32, i32, i32
  }
}

</mosaic_0001>

<bundles_post_ra>
// kernel: _conv2d_forward.1
= control target key start
LH: loop header
LB: loop body
LE: loop exit
PB: predicated region body
PF: predicated region fallthrough
CT: control target
= control target key end

     0   :  { %s1065_s9 = smov 0   ;;  %s1067_s10 = smov 0   ;;  %s1234_s0 = inlined_call_operand.vmem [shape: bf16[2,18,18,4], index: 0, kind: input, shape index: {}]   ;;  %s1235_s1 = inlined_call_operand.vmem [shape: bf16[9,4,128], index: 1, kind: input, shape index: {}]   ;;  %s1236_s2 = inlined_call_operand.vmem [shape: f32[2,16,16,128], index: 2, kind: output, shape index: {}]  }
   0x1   :  { %s1069_s11 = smov 0  }
   0x2 LB: > { %s24_s12 = sadd.s32 1, %s1038_s10  ;;  %p834_p0 = scmp.ge.s32.totalorder %s1042_s11, 1  ;;  %s1042_s11 = sphi %s1069_s11, %s12_s11   ;;  %s1038_s10 = sphi %s1067_s10, %s1238_s10   ;;  %s1034_s9 = sphi %s1065_s9, %s1237_s9  }
   0x3   : > { %p26_p1 = scmp.ge.s32.totalorder %s24_s12, 2  ;;  %p126_p2 = scmp.lt.s32.totalorder %s1042_s11, 3 }
   0x5   : > { %s1240_s12 = smov (%p26_p1, %s24_s12), 0  ;;  %p127_p3 = pnand %p834_p0, %p126_p2 }
   0x6   : > { %p153_p4 = scmp.lt.s32.totalorder (!%p127_p3), %s1034_s9, 1  ;;  %v1086_v0 = vld [vmem:[%s1235_s1] sm:$0x3] (!%p127_p3)  ;;  %v1091_v1 = vld [vmem:[%s1235_s1 + $0x2] sm:$0x3] (!%p127_p3)  ;;  %s1138_s15 = smov (!%p127_p3), 0  }
   0x7   : > { %130 = sbr.rel (%p127_p3) target bundleno = 299 (0x12b), region = 28  ;;  %v1096_v2 = vld [vmem:[%s1235_s1 + $0x4] sm:$0x3] (!%p127_p3)  ;;  %v1101_v3 = vld [vmem:[%s1235_s1 + $0x6] sm:$0x3] (!%p127_p3) }
   0x8   : > { %v1106_v4 = vld [vmem:[%s1235_s1 + $0x8] sm:$0x3] (!%p127_p3)  ;;  %v1111_v5 = vld [vmem:[%s1235_s1 + $0xa] sm:$0x3] (!%p127_p3)  ;;  %v1116_v6 = vld [vmem:[%s1235_s1 + $0xc] sm:$0x3] (!%p127_p3) }
   0x9   : > { %v1121_v7 = vld [vmem:[%s1235_s1 + $0xe] sm:$0x3] (!%p127_p3)  ;;  %v1126_v8 = vld [vmem:[%s1235_s1 + $0x10] sm:$0x3] (!%p127_p3) }
   0xe   : > { %s1242_s9 = smov (!%p153_p4, %s1034_s9), 1 }
   0xf   : > { %s975_s3 = smul.u32 216, %s1242_s9  ;;  %s871_s4 = sshll.u32 %s1242_s9, 8 }
  0x10   : > { %s1131_s7 = scalar_lea.vmem %s1236_s2, %s871_s4 }
  0x11   : > { %s1136_s14 = scalar_lea.vmem %s1234_s0, %s975_s3 }
  0x12 LB: >> { %vm228_vm0 = vcmask 1041408   ;;  %v1048_v9 = vmov 0.0   ;;  %p195_p5 = scmp.lt.s32.totalorder %s1046_s15, 15  ;;  %vm1049_vm1 = vmmov 0   ;;  %vm211_vm2 = vsmask.f32 7424  ;;  %s1046_s15 = sphi %s1138_s15, %s193_s15  }
  0x13   : >> { %915 = vmatprep.subr.bf16.mxu0 %v1048_v9  ;;  %891 = vmatprep.subr.bf16.mxu1 %v1048_v9  ;;  %v451_v10 = vsel %vm228_vm0, %v1106_v4, 0  ;;  %v230_v11 = vsel %vm228_vm0, %v1091_v1, 0  ;;  %vm224_vm3 = vcmask 31744   ;;  %v276_v28 = vsel %vm228_vm0, %v1086_v0, 0  ;;  %s868_s18 = sshll.u32 %s1046_s15, 4 }
  0x14   : >> { %916 = vmatpush3.bf16.msra.mxu0 %v451_v10  ;;  %892 = vmatpush3.bf16.msra.mxu1 %v230_v11  ;;  %s196_s9 = scalar_select %p195_p5, %s1046_s15, 15  ;;  %v503_v30 = vsel %vm228_vm0, %v1111_v5, 0  ;;  %vm319_vm4 = vcmask 1046528   ;;  %v327_v35 = vsel %vm228_vm0, %v1096_v2, 0  ;;  %v564_v36 = vsel %vm228_vm0, %v1116_v6, 0 }
  0x15   : >> { %893 = vmatprep.mubr.msk.bf16.mxu1 %vm1049_vm1, %v1048_v9  ;;  %917 = vmatprep.mubr.msk.bf16.mxu0 %vm1049_vm1, %v1048_v9  ;;  %v388_v41 = vsel %vm228_vm0, %v1101_v3, 0  ;;  %v627_v44 = vsel %vm228_vm0, %v1121_v7, 0  ;;  %v679_v51 = vsel %vm228_vm0, %v1126_v8, 0  ;;  %s725_s19 = scalar_lea.vmem %s1131_s7, %s868_s18  ;;  %s193_s15 = sadd.s32 1, %s1046_s15  }
  0x16   : >> { %921 = vmatprep.subr.bf16.mxu0 %v1048_v9  ;;  %897 = vmatprep.subr.bf16.mxu1 %v1048_v9  ;;  %s872_s16 = smul.u32 12, %s196_s9  ;;  %p190_p6 = scmp.ge.s32.totalorder %s193_s15, 16  }
  0x18   : >> { %s1158_s17 = scalar_lea.vmem %s1136_s14, %s872_s16 }
  0x19   : >> { %v1010_v12 = vld [vmem:[%s1158_s17] sm:$0xff]   ;;  %v1011_v13 = vld [vmem:[%s1158_s17 + $0x8] ss:$0 sps:$4 sm:$0x11]   ;;  %v1163_v14 = vld [vmem:[%s1158_s17 + $0xc] sm:$0xff]  }
  0x1a   : >> { %v213_v15 = vshrl.u32 %v1010_v12, 16  ;;  %v215_v16 = vshll.u32 %v1010_v12, 16  ;;  %v220_v17 = vshll.u32 %v1011_v13, 16  ;;  %v1013_v18 = vld [vmem:[%s1158_s17 + $0x14] ss:$0 sps:$4 sm:$0x11]  }
  0x1b   : >> { %v436_v19 = vshrl.u32 %v1163_v14, 16  ;;  %v438_v20 = vshll.u32 %v1163_v14, 16  ;;  %v443_v23 = vshll.u32 %v1013_v18, 16  ;;  %v496_v32 = vrot.slane %v1163_v14, 1  ;;  %v1014_v39 = vld [vmem:[%s1158_s17 + $0x18] sm:$0xff]  }
  0x1c   : >> { %v217_v21 = vrot.slane %v215_v16, 1  ;;  %v222_v22 = vrot.slane %v220_v17, 1  ;;  %v497_v33 = vrot.slane %v1013_v18, 1  ;;  %v320_v37 = vrot.slane %v1010_v12, 1 }
  0x1d   : >> { %v440_v24 = vrot.slane %v438_v20, 1  ;;  %v445_v26 = vrot.slane %v443_v23, 1  ;;  %v321_v38 = vrot.slane %v1011_v13, 1  ;;  %v1015_v42 = vld [vmem:[%s1158_s17 + $0x20] ss:$0 sps:$4 sm:$0x11]  }
  0x1e   : >> { %v218_v25 = vor.u32 %v217_v21, %v213_v15  ;;  %v498_v34 = vsel %vm319_vm4, %v496_v32, %v497_v33  ;;  %v614_v43 = vshll.u32 %v1014_v39, 16  ;;  %v612_v45 = vshrl.u32 %v1014_v39, 16 }
  0x1f   : >> { %v441_v27 = vor.u32 %v440_v24, %v436_v19  ;;  %v322_v40 = vsel %vm319_vm4, %v320_v37, %v321_v38  ;;  %v619_v47 = vshll.u32 %v1015_v42, 16  ;;  %v672_v52 = vrot.slane %v1014_v39, 1 }
  0x20   : >> { %v223_v29 = vsel %vm211_vm2, %v218_v25, %v222_v22  ;;  %v616_v46 = vrot.slane %v614_v43, 1  ;;  %v673_v53 = vrot.slane %v1015_v42, 1 }
  0x21   : >> { %894 = vmatmul.mubr.msk.bf16.vlgmr.msra.gmra.mrb[0].mxu1 %vm224_vm3, %v223_v29  ;;  %v446_v31 = vsel %vm211_vm2, %v441_v27, %v445_v26  ;;  %v621_v49 = vrot.slane %v619_v47, 1 }
  0x22   : >> { %918 = vmatmul.mubr.msk.bf16.vlgmr.msra.gmra.mrb[0].mxu0 %vm224_vm3, %v446_v31  ;;  %898 = vmatpush3.bf16.msra.mxu1 %v276_v28  ;;  %v617_v48 = vor.u32 %v616_v46, %v612_v45  ;;  %v674_v54 = vsel %vm319_vm4, %v672_v52, %v673_v53 }
  0x23   : >> { %922 = vmatpush3.bf16.msra.mxu0 %v503_v30  ;;  %899 = vmatprep.mubr.msk.bf16.mxu1 %vm1049_vm1, %v1048_v9 }
  0x24   : >> { %923 = vmatprep.mubr.msk.bf16.mxu0 %vm1049_vm1, %v1048_v9  ;;  %927 = vmatprep.subr.bf16.mxu0 %v1048_v9  ;;  %v622_v50 = vsel %vm211_vm2, %v617_v48, %v621_v49 }
  0x25   : >> { %903 = vmatprep.subr.bf16.mxu1 %v1048_v9 }
  0x2d   : >> { %900 = vmatmul.mubr.msk.bf16.vlgmr.msra.gmra.mrb[0].mxu1 %vm224_vm3, %v1010_v12 }
  0x2e   : >> { %924 = vmatmul.mubr.msk.bf16.vlgmr.msra.gmra.mrb[0].mxu0 %vm224_vm3, %v498_v34  ;;  %904 = vmatpush3.bf16.msra.mxu1 %v327_v35 }
  0x2f   : >> { %928 = vmatpush3.bf16.msra.mxu0 %v564_v36  ;;  %905 = vmatprep.mubr.msk.bf16.mxu1 %vm1049_vm1, %v1048_v9 }
  0x30   : >> { %929 = vmatprep.mubr.msk.bf16.mxu0 %vm1049_vm1, %v1048_v9  ;;  %933 = vmatprep.subr.bf16.mxu0 %v1048_v9 }
  0x31   : >> { %909 = vmatprep.subr.bf16.mxu1 %v1048_v9 }
  0x39   : >> { %906 = vmatmul.mubr.msk.bf16.vlgmr.msra.gmra.mrb[0].mxu1 %vm224_vm3, %v322_v40 }
  0x3a   : >> { %930 = vmatmul.mubr.msk.bf16.vlgmr.msra.gmra.mrb[0].mxu0 %vm224_vm3, %v1014_v39  ;;  %910 = vmatpush3.bf16.msra.mxu1 %v388_v41 }
  0x3b   : >> { %934 = vmatpush3.bf16.msra.mxu0 %v627_v44  ;;  %911 = vmatprep.mubr.msk.bf16.mxu1 %vm1049_vm1, %v1048_v9 }
  0x3c   : >> { %935 = vmatprep.mubr.msk.bf16.mxu0 %vm1049_vm1, %v1048_v9  ;;  %939 = vmatprep.subr.bf16.mxu0 %v1048_v9 }
  0x45   : >> { %912 = vmatmul.mubr.msk.bf16.vlgmr.msra.gmra.mrb[0].mxu1 %vm224_vm3, %v1163_v14 }
  0x46   : >> { %936 = vmatmul.mubr.msk.bf16.vlgmr.msra.gmra.mrb[0].mxu0 %vm224_vm3, %v622_v50 }
  0x47   : >> { %940 = vmatpush3.bf16.msra.mxu0 %v679_v51  ;;  %941 = vmatprep.mubr.msk.bf16.mxu0 %vm1049_vm1, %v1048_v9 }
  0x52   : >> { %942 = vmatmul.mubr.msk.bf16.vlgmr.msra.gmra.mrb[0].mxu0 %vm224_vm3, %v674_v54 }
 0x118   : >> { %v424_v55 = vpop.f32.mrb[0].mxu1 }
 0x119   : >> { %v913_v56 = vpop.f32.mrb[1].mxu1 }
 0x11a   : >> { %v427_v57 = vpop.f32.mrb[2].mxu1 }
 0x11b   : >> { %v914_v58 = vpop.f32.mrb[3].mxu1 }
 0x124   : > { %192 = sbr.rel (!%p190_p6) target bundleno = 18 (0x12), region = 77 }
 0x125   : >> { %v715_v59 = vpop.f32.mrb[0].mxu0 }
 0x126   : >> { %v945_v60 = vadd.f32 %v715_v59, %v424_v55  ;;  %v943_v61 = vpop.f32.mrb[1].mxu0 }
 0x127   : >> { %v718_v62 = vpop.f32.mrb[2].mxu0 }
 0x128   : >> { %726 = vst [vmem:[%s725_s19] sm:$0xff] %v945_v60  ;;  %v946_v63 = vadd.f32 %v718_v62, %v427_v57  ;;  %v944_v10 = vpop.f32.mrb[3].mxu0 }
 0x12a   : >> { %727 = vst [vmem:[%s725_s19 + $0x8] sm:$0xff] %v946_v63 }
 0x12b PF: > { %s12_s11 = sadd.s32 1, %s1042_s11   ;;  %s1237_s9 = smov %s1038_s10 }
 0x12c   : > { %p9_p7 = scmp.ge.s32.totalorder %s12_s11, 4   ;;  %s1238_s10 = smov %s1240_s12 }
 0x12e   :  { %11 = sbr.rel (!%p9_p7) target bundleno = 2 (0x2), region = 88 }

</bundles_post_ra>
